<compile_context>
chip_gen: v5e
topology: v5e:2x2
jax: 0.10.0
libtpu: 0.0.40
codegen_flags: <defaults>
</compile_context>

<pallas_src>
import jax
import jax.numpy as jnp
from jax.experimental import pallas as pl
from jax.experimental.pallas import tpu as pltpu

_TARGET_STEPS = 8  # aim for >=8 grid steps so DMAs pipeline and v7x can split.


def _h_sigmoid_kernel(x_ref, o_ref):
    x = x_ref[...]
    # relu6(x + 3) * (1/6) — multiply by reciprocal instead of dividing:
    # avoids the divide lowering (EUP recip + correction) and keeps VPU slack.
    y = jnp.minimum(jnp.maximum(x + 3.0, 0.0), 6.0) * (1.0 / 6.0)
    o_ref[...] = y.astype(o_ref.dtype)


def _sublane_min(dtype) -> int:
    itemsize = jnp.dtype(dtype).itemsize
    if itemsize >= 4:
        return 8
    if itemsize == 2:
        return 16
    return 32


def _round_up(v: int, m: int) -> int:
    return (v + m - 1) // m * m


def _pick_lanes(n_elem: int):
    # Widest lane width (multiple of 128) that divides n_elem exactly.
    for lanes in (2048, 1024, 512, 256, 128):
        if n_elem % lanes == 0:
            return lanes
    return None


def _chip_params():
    """Per-generation (block_bytes, vmem_limit_bytes). Resident VMEM ~= 4 x block."""
    kind = ""
    try:
        kind = jax.devices()[0].device_kind.lower()
    except Exception:
        pass
    vmem_cap = None
    try:
        vmem_cap = pltpu.get_tpu_info().vmem_capacity_bytes
    except Exception:
        pass
    if "v7" in kind or (vmem_cap is not None and vmem_cap <= 64 * 2**20):
        # v7x: 64 MiB VMEM / ~3.2 TB/s HBM. Bigger blocks amortize the ~0.35us
        # per-step cost; raise the scoped-VMEM limit so 4 x 6 MiB fits safely.
        return 6 * 2**20, 40 * 2**20
    if "v6" in kind:
        # v6e: 4 MiB blocks -> 16 MiB resident, well under the 32 MiB default.
        return 4 * 2**20, None
    # v5e (16 MiB default scoped limit) and unknown chips: stay conservative.
    return 2 * 2**20, None


def _launch(x2d, block_shape, grid, index_map, vmem_limit):
    return pl.pallas_call(
        _h_sigmoid_kernel,
        out_shape=jax.ShapeDtypeStruct(x2d.shape, x2d.dtype),
        grid_spec=pltpu.PrefetchScalarGridSpec(
            num_scalar_prefetch=0,
            grid=grid,
            in_specs=[pl.BlockSpec(block_shape, index_map)],
            out_specs=pl.BlockSpec(block_shape, index_map),
        ),
        compiler_params=pltpu.CompilerParams(
            dimension_semantics=("parallel",),
            vmem_limit_bytes=vmem_limit,
        ),
    )(x2d)


def _h_sigmoid_impl(x: jax.Array) -> jax.Array:
    if not jnp.issubdtype(x.dtype, jnp.floating):
        raise TypeError(f"h_sigmoid expects a floating dtype, got {x.dtype}")
    orig_shape = x.shape
    dtype = x.dtype
    n_elem = x.size
    itemsize = jnp.dtype(dtype).itemsize
    sub = _sublane_min(dtype)
    block_bytes, vmem_limit = _chip_params()

    x_flat = jnp.ravel(x)  # metadata-only under jit (contiguous row-major)
    lanes = _pick_lanes(n_elem)

    if lanes is not None:
        # Fast path: lane-dense (rows, lanes) slab, grid tiles the rows axis.
        n_rows = n_elem // lanes
        x2d = x_flat.reshape(n_rows, lanes)
        max_rows = max(sub, (block_bytes // (lanes * itemsize)) // sub * sub)
        desired = _round_up(pl.cdiv(n_rows, _TARGET_STEPS), sub)
        tile_rows = min(max_rows, desired)
        if tile_rows >= n_rows:
            tile_rows = n_rows  # full rows extent (always legal)
        grid = (pl.cdiv(n_rows, tile_rows),)
        out2d = _launch(x2d, (tile_rows, lanes), grid, lambda i: (i, 0), vmem_limit)
    else:
        # Ragged path: view as a single (1, n_elem) row and tile along lanes.
        # The cdiv grid's partial last block is handled by Pallas masked
        # boundary stores -> no jnp.pad and no post-slice (single HBM pass).
        x2d = x_flat.reshape(1, n_elem)
        granule = 128
        # A 1-row block occupies 8 sublanes per (8,128) VMEM tile -> 8x footprint.
        max_lanes = max(granule, (block_bytes // (8 * itemsize)) // granule * granule)
        desired = _round_up(pl.cdiv(n_elem, _TARGET_STEPS), granule)
        tile_lanes = min(max_lanes, desired)
        if tile_lanes >= n_elem:
            tile_lanes = n_elem  # full lanes extent (always legal)
        grid = (pl.cdiv(n_elem, tile_lanes),)
        out2d = _launch(x2d, (1, tile_lanes), grid, lambda i: (0, i), vmem_limit)

    return out2d.reshape(orig_shape)


h_sigmoid = jax.jit(_h_sigmoid_impl)


def h_sigmoid_ref(x: jax.Array) -> jax.Array:
    return jnp.clip(x + 3.0, 0.0, 6.0) / 6.0


if __name__ == "__main__":
    key = jax.random.PRNGKey(0)
    k1, k2, k3 = jax.random.split(key, 3)

    # 1) Small NCHW input (element count divisible by 128 -> fast slab path).
    x1 = jax.random.normal(k1, (2, 4, 16, 16), dtype=jnp.float32) * 4.0
    out1 = jax.block_until_ready(h_sigmoid(x1))
    assert out1.shape == x1.shape and out1.dtype == x1.dtype
    assert jnp.allclose(out1, h_sigmoid_ref(x1), atol=1e-6, rtol=1e-6)

    # 2) Odd shape -> (1, n_elem) ragged-lanes path with multi-step cdiv grid
    #    and a masked boundary store on the last block (no pad, no slice).
    x2 = jax.random.normal(k2, (3, 5, 7, 9), dtype=jnp.float32) * 4.0
    out2 = jax.block_until_ready(h_sigmoid(x2))
    assert out2.shape == x2.shape and out2.dtype == x2.dtype
    assert jnp.allclose(out2, h_sigmoid_ref(x2), atol=1e-6, rtol=1e-6)

    # 3) bf16 input: dtype-aware (16-sublane) tiling and a genuinely
    #    multi-step pipelined grid (>= 8 steps) on all generations.
    x3 = (jax.random.normal(k3, (8, 32, 64, 64), dtype=jnp.float32) * 4.0).astype(
        jnp.bfloat16
    )
    out3 = jax.block_until_ready(h_sigmoid(x3))
    assert out3.shape == x3.shape and out3.dtype == x3.dtype
    assert jnp.allclose(
        out3.astype(jnp.float32),
        h_sigmoid_ref(x3.astype(jnp.float32)),
        atol=1e-2,
        rtol=1e-2,
    )

    print("KERNEL_OK")
</pallas_src>

<mosaic_0001>
module attributes {stable_mosaic.version = 11 : i64} {
  func.func @_h_sigmoid_kernel(%arg0: i32, %arg1: memref<1x2048xf32, #tpu.memory_space<vmem>>, %arg2: memref<1x2048xf32, #tpu.memory_space<vmem>>) attributes {dimension_semantics = [#tpu.dimension_semantics<parallel>], iteration_bounds = array<i64: 1>, scalar_prefetch = 0 : i64, scratch_operands = 0 : i64, tpu.core_type = #tpu.core_type<tc>, window_params = [{transform_indices = @transform_0, window_bounds = array<i64: 1, 2048>}, {transform_indices = @transform_1, window_bounds = array<i64: 1, 2048>}]} {
    %c0 = arith.constant 0 : index
    %c0_0 = arith.constant 0 : index
    %0 = vector.load %arg1[%c0, %c0_0] : memref<1x2048xf32, #tpu.memory_space<vmem>>, vector<1x2048xf32>
    %cst = arith.constant 3.000000e+00 : f32
    %1 = vector.broadcast %cst : f32 to vector<1x2048xf32>
    %2 = arith.addf %0, %1 : vector<1x2048xf32>
    %cst_1 = arith.constant 0.000000e+00 : f32
    %3 = vector.broadcast %cst_1 : f32 to vector<1x2048xf32>
    %4 = arith.maximumf %2, %3 : vector<1x2048xf32>
    %cst_2 = arith.constant 6.000000e+00 : f32
    %5 = vector.broadcast %cst_2 : f32 to vector<1x2048xf32>
    %6 = arith.minimumf %4, %5 : vector<1x2048xf32>
    %cst_3 = arith.constant 0.166666672 : f32
    %7 = vector.broadcast %cst_3 : f32 to vector<1x2048xf32>
    %8 = arith.mulf %6, %7 : vector<1x2048xf32>
    %c0_4 = arith.constant 0 : index
    %c0_5 = arith.constant 0 : index
    %9 = vector.load %arg2[%c0_4, %c0_5] : memref<1x2048xf32, #tpu.memory_space<vmem>>, vector<1x2048xf32>
    tpu.vector_store %arg2[%c0_4, %c0_5], %8 {strides = array<i32>} : memref<1x2048xf32, #tpu.memory_space<vmem>>, vector<1x2048xf32>,
    return
  }
  func.func @transform_0(%arg0: i32) -> (i32, i32) {
    %c0_i32 = arith.constant 0 : i32
    %c0_i32_0 = arith.constant 0 : i32
    return %arg0, %c0_i32 : i32, i32
  }
  func.func @transform_1(%arg0: i32) -> (i32, i32) {
    %c0_i32 = arith.constant 0 : i32
    %c0_i32_0 = arith.constant 0 : i32
    return %arg0, %c0_i32 : i32, i32
  }
}

</mosaic_0001>

<bundles_post_ra>
// kernel: _h_sigmoid_impl.1
= control target key start
LH: loop header
LB: loop body
LE: loop exit
PB: predicated region body
PF: predicated region fallthrough
CT: control target
= control target key end

     0   :  { %s46_s0 = inlined_call_operand.vmem [shape: f32[1,2048], index: 0, kind: input, shape index: {}]   ;;  %s47_s1 = inlined_call_operand.vmem [shape: f32[1,2048], index: 1, kind: output, shape index: {}]  }
   0x1   :  { %v8_v0 = vld [vmem:[%s46_s0] sm:$0xff]  ;;  %v9_v1 = vld [vmem:[%s46_s0 + $0x8] sm:$0xff] }
   0x2   :  { %v10_v2 = vadd.f32 3.0, %v8_v0  ;;  %v11_v3 = vadd.f32 3.0, %v9_v1 }
   0x4   :  { %v12_v4 = vmax.f32 %v10_v2, 0.0  ;;  %v13_v5 = vmax.f32 %v11_v3, 0.0 }
   0x6   :  { %v14_v6 = vmin.f32 %v12_v4, 6.0  ;;  %v15_v7 = vmin.f32 %v13_v5, 6.0 }
   0x8   :  { %v16_v8 = vmul.f32 0.16666667, %v14_v6  ;;  %v17_v9 = vmul.f32 0.16666667, %v15_v7 }
   0xa   :  { %18 = vst [vmem:[%s47_s1] sm:$0xff] %v16_v8 }
   0xb   :  { %19 = vst [vmem:[%s47_s1 + $0x8] sm:$0xff] %v17_v9 }

</bundles_post_ra>
